<compile_context>
chip_gen: v7x
topology: tpu7x:2x2x1
jax: 0.10.0
libtpu: 0.0.40
codegen_flags: <defaults>
</compile_context>

<pallas_src>
import jax
import jax.numpy as jnp
from jax import lax
from jax.experimental import pallas as pl
from jax.experimental.pallas import tpu as pltpu


# ---------------------------------------------------------------------------
# Generation-aware VMEM budgets.
# ---------------------------------------------------------------------------

def _vmem_capacity_bytes():
    """Physical VMEM per TensorCore; conservative 64 MiB (v7x) if unknown."""
    try:
        cap = int(getattr(pltpu.get_tpu_info(), "vmem_capacity_bytes", 0))
        if cap > 0:
            return cap
    except Exception:
        pass
    return 64 * 1024 * 1024


def _budgets():
    cap = _vmem_capacity_bytes()
    vmem_limit = (cap * 85) // 100           # ~108 MiB v5e/v6e, ~54 MiB v7x
    tile_budget = (vmem_limit * 7) // 10     # headroom for compiler scratch
    keys_bufs = 3 if cap >= 96 * 1024 * 1024 else 2
    return vmem_limit, tile_budget, keys_bufs


def _per_row_bytes(S, Sk, Dp, keys_bufs, in_bytes):
    """Approx. VMEM bytes per batch row per grid step (tiles + f32 temps)."""
    keys_tiles = keys_bufs * Sk * Dp * in_bytes      # pipelined keys buffers
    temps = 3 * Sk * Dp * 4                          # uk, tanh(e), e*va (f32)
    q_io = 2 * Dp * in_bytes                         # query (double buffered)
    out_io = 2 * Dp * 4 + 2 * S * 4                  # context + weights blocks
    scratch = (2 * Dp + 2) * 4 + S * 4               # wq/acc/m/l + score stash
    return keys_tiles + temps + q_io + out_io + scratch


def _fixed_bytes(Dp, in_bytes):
    # Wa/Ua weights (single-buffered, pl.Buffered(1)) + three (1, Dp) rows.
    return 2 * Dp * Dp * in_bytes + 3 * Dp * 4


def _choose_seq_tile(B, S, Dp, keys_bufs, tile_budget, in_bytes):
    """Largest kv tile (multiple of 8 dividing S, or S itself) that leaves a
    reasonable batch tile inside the VMEM budget."""
    fixed = _fixed_bytes(Dp, in_bytes)
    target_bb = min(max(B, 8), 64)

    def fits(sk):
        return fixed + target_bb * _per_row_bytes(S, sk, Dp, keys_bufs,
                                                  in_bytes) <= tile_budget

    if fits(S):
        return S
    divs = [d for d in range(8, S, 8) if S % d == 0]
    for d in sorted(divs, reverse=True):
        if fits(d):
            return d
    if divs:
        return divs[0]
    # TODO(synk): pad + mask the sequence axis (scores -> -inf) when S has no
    # usable multiple-of-8 divisor; fall back to the full sequence for now.
    return S


def _choose_batch_tile(B, per_row, fixed, tile_budget):
    cap = max(1, (tile_budget - fixed) // max(per_row, 1))
    cap = min(cap, 512)
    if B <= 16 and B <= max(cap, 8):
        return B, B                                   # one full-batch block
    bb_max = max(8, (min(cap, B) // 8) * 8)
    cands = list(range(8, bb_max + 1, 8))

    def padded(bb):
        return -(-B // bb) * bb

    min_pad = min(padded(bb) for bb in cands)
    best_bb = max(bb for bb in cands if padded(bb) == min_pad)
    # Prefer an even grid length (v7x shards the 'parallel' batch axis across
    # its two TensorCores) when it costs at most ~25% extra batch padding.
    even = [bb for bb in cands if (-(-B // bb)) % 2 == 0]
    if even:
        min_even = min(padded(bb) for bb in even)
        if 4 * min_even <= 5 * min_pad:
            best_bb = max(bb for bb in even if padded(bb) == min_even)
            min_pad = min_even
    return best_bb, min_pad


# ---------------------------------------------------------------------------
# Kernel.
# ---------------------------------------------------------------------------

def _make_kernel(num_kv):
    def kernel(q_ref, k_ref, waw_ref, wab_ref, uaw_ref, uab_ref, va_ref,
               ctx_ref, w_ref, wq_sc, m_sc, l_sc, acc_sc, s_sc):
        kv = pl.program_id(1)

        @pl.when(kv == 0)
        def _():
            # Wa(query) is kv-invariant: compute it once per batch tile.
            wq_sc[...] = (jnp.dot(q_ref[...], waw_ref[...],
                                  preferred_element_type=jnp.float32)
                          + wab_ref[...])
            m_sc[...] = jnp.full(m_sc.shape, -jnp.inf, jnp.float32)
            l_sc[...] = jnp.zeros(l_sc.shape, jnp.float32)
            acc_sc[...] = jnp.zeros(acc_sc.shape, jnp.float32)

        k = k_ref[...]                                     # (Bb, Sk, Dp)
        bb, sk, dp = k.shape

        # Ua(keys) on the MXU.  When the kv tile is sublane-aligned the
        # (Bb,Sk,Dp)->(Bb*Sk,Dp) reshape is layout-preserving (no VMEM copy);
        # otherwise contract the last axis directly with a 3-D dot_general so
        # no copy of the keys tile is ever materialized (perf-review item).
        if sk % 8 == 0:
            uk = jnp.dot(k.reshape(bb * sk, dp), uaw_ref[...],
                         preferred_element_type=jnp.float32).reshape(bb, sk, dp)
        else:
            uk = lax.dot_general(k, uaw_ref[...],
                                 dimension_numbers=(((2,), (0,)), ((), ())),
                                 preferred_element_type=jnp.float32)
        uk = uk + uab_ref[...]

        # tanh on the EUP; Va(e) as a VPU lane multiply + XLU lane reduce (an
        # MXU matvec with N=1 would waste the systolic array).  Va's bias is
        # dropped: the softmax over S is shift-invariant, so it cannot change
        # either returned output.
        e = jnp.tanh(wq_sc[...][:, None, :] + uk)           # (Bb, Sk, Dp) f32
        s = jnp.sum(e * va_ref[...], axis=-1)               # (Bb, Sk)     f32

        # Online-softmax update (exact once finalized).
        m_prev = m_sc[...]
        m_new = jnp.maximum(m_prev, jnp.max(s, axis=-1, keepdims=True))
        alpha = jnp.exp(m_prev - m_new)
        p = jnp.exp(s - m_new)                               # (Bb, Sk)
        l_sc[...] = alpha * l_sc[...] + jnp.sum(p, axis=-1, keepdims=True)

        # Context accumulation as a batched MXU matvec: no (Bb, Sk, Dp)
        # broadcast temporary (perf-review item); the MXU is idle here.
        pk = jnp.einsum("bqk,bkd->bqd", p[:, None, :].astype(k.dtype), k,
                        preferred_element_type=jnp.float32)[:, 0, :]
        acc_sc[...] = alpha * acc_sc[...] + pk
        m_sc[...] = m_new

        if num_kv > 1:
            # Stash raw scores with kv on the leading scratch axis (cheap
            # dynamic store); renormalized exactly on the final step.
            s_sc[kv] = s

        @pl.when(kv == num_kv - 1)
        def _():
            inv_l = pl.reciprocal(l_sc[...], approx=False)   # exact (1e-5 check)
            ctx_ref[...] = (acc_sc[...] * inv_l).astype(ctx_ref.dtype)
            if num_kv == 1:
                w_ref[...] = (p * inv_l).astype(w_ref.dtype)
            else:
                m_fin = m_sc[...]
                for i in range(num_kv):                      # static slices
                    w_ref[:, i * sk:(i + 1) * sk] = (
                        jnp.exp(s_sc[i] - m_fin) * inv_l).astype(w_ref.dtype)

    return kernel


# ---------------------------------------------------------------------------
# Wrapper.
# ---------------------------------------------------------------------------

def nn_attention(query, keys, params, *, block_b=None, block_s=None,
                 use_bf16_matmul=False):
    """query: (B, 1, D), keys: (B, S, D) -> (context (B,1,D), weights (B,1,S))."""
    B, Tq, D = query.shape
    Bk, S, Dk = keys.shape
    assert Tq == 1 and Bk == B and Dk == D

    out_dtype = query.dtype
    vmem_limit, tile_budget, keys_bufs = _budgets()
    in_bytes = 2 if use_bf16_matmul else jnp.dtype(query.dtype).itemsize

    # Lane padding: with D < 128 every vreg is mostly padding and the output
    # stores are masked partial stores; zero-padding is exact for softmax and
    # context (extra columns stay identically zero and are sliced off).
    Dp = 128 * ((D + 127) // 128) if D < 128 else D
    # TODO(synk): also pad + mask S to a lane multiple when S < 128 (needs
    # padded scores forced to -inf before the softmax); skipped for now.

    Sk = block_s if block_s is not None else _choose_seq_tile(
        B, S, Dp, keys_bufs, tile_budget, in_bytes)
    assert S % Sk == 0, "block_s must divide the sequence length"
    per_row = _per_row_bytes(S, Sk, Dp, keys_bufs, in_bytes)
    fixed = _fixed_bytes(Dp, in_bytes)
    if block_b is not None:
        Bb = block_b
        B_pad = -(-B // Bb) * Bb
    else:
        Bb, B_pad = _choose_batch_tile(B, per_row, fixed, tile_budget)

    num_kv = S // Sk
    n_b = B_pad // Bb
    total_steps = n_b * num_kv

    # --- wrapper-side layout plumbing (all exact) ---------------------------
    q2 = query.reshape(B, D)
    wa_w = params["wa_w"].T                 # (in, out)
    ua_w = params["ua_w"].T
    wa_b = params["wa_b"].reshape(1, D)
    ua_b = params["ua_b"].reshape(1, D)
    va_w = params["va_w"].reshape(1, D)
    # params["va_b"] intentionally unused: a no-op under the softmax.

    keys_p = keys
    if Dp != D:
        pad_d = Dp - D
        q2 = jnp.pad(q2, ((0, 0), (0, pad_d)))
        keys_p = jnp.pad(keys_p, ((0, 0), (0, 0), (0, pad_d)))
        wa_w = jnp.pad(wa_w, ((0, pad_d), (0, pad_d)))
        ua_w = jnp.pad(ua_w, ((0, pad_d), (0, pad_d)))
        wa_b = jnp.pad(wa_b, ((0, 0), (0, pad_d)))
        ua_b = jnp.pad(ua_b, ((0, 0), (0, pad_d)))
        va_w = jnp.pad(va_w, ((0, 0), (0, pad_d)))
    if B_pad != B:
        q2 = jnp.pad(q2, ((0, B_pad - B), (0, 0)))
        keys_p = jnp.pad(keys_p, ((0, B_pad - B), (0, 0), (0, 0)))

    if use_bf16_matmul:
        # Full-rate bf16 MXU operands on v6e/v7x; accumulation stays f32.
        q2 = q2.astype(jnp.bfloat16)
        keys_p = keys_p.astype(jnp.bfloat16)
        wa_w = wa_w.astype(jnp.bfloat16)
        ua_w = ua_w.astype(jnp.bfloat16)

    const_mode = pl.Buffered(1)             # grid-invariant blocks: one buffer
    if total_steps >= 3:
        keys_spec = pl.BlockSpec((Bb, Sk, Dp), lambda b, kv: (b, kv, 0),
                                 pipeline_mode=pl.Buffered(keys_bufs))
    else:
        keys_spec = pl.BlockSpec((Bb, Sk, Dp), lambda b, kv: (b, kv, 0))

    grid_spec = pltpu.PrefetchScalarGridSpec(
        num_scalar_prefetch=0,
        grid=(n_b, num_kv),
        in_specs=[
            pl.BlockSpec((Bb, Dp), lambda b, kv: (b, 0)),                  # query
            keys_spec,                                                     # keys
            pl.BlockSpec((Dp, Dp), lambda b, kv: (0, 0), pipeline_mode=const_mode),
            pl.BlockSpec((1, Dp), lambda b, kv: (0, 0), pipeline_mode=const_mode),
            pl.BlockSpec((Dp, Dp), lambda b, kv: (0, 0), pipeline_mode=const_mode),
            pl.BlockSpec((1, Dp), lambda b, kv: (0, 0), pipeline_mode=const_mode),
            pl.BlockSpec((1, Dp), lambda b, kv: (0, 0), pipeline_mode=const_mode),
        ],
        out_specs=[
            pl.BlockSpec((Bb, Dp), lambda b, kv: (b, 0)),                  # context
            pl.BlockSpec((Bb, S), lambda b, kv: (b, 0)),                   # weights
        ],
        scratch_shapes=[
            pltpu.VMEM((Bb, Dp), jnp.float32),          # Wa(query) stash
            pltpu.VMEM((Bb, 1), jnp.float32),           # running max
            pltpu.VMEM((Bb, 1), jnp.float32),           # running denominator
            pltpu.VMEM((Bb, Dp), jnp.float32),          # context accumulator
            pltpu.VMEM((num_kv, Bb, Sk) if num_kv > 1 else (1, 8, 128),
                       jnp.float32),                    # raw-score stash
        ],
    )

    ctx_p, w_p = pl.pallas_call(
        _make_kernel(num_kv),
        grid_spec=grid_spec,
        out_shape=(
            jax.ShapeDtypeStruct((B_pad, Dp), out_dtype),
            jax.ShapeDtypeStruct((B_pad, S), out_dtype),
        ),
        compiler_params=pltpu.CompilerParams(
            dimension_semantics=("parallel", "arbitrary"),
            vmem_limit_bytes=int(vmem_limit),
        ),
    )(q2, keys_p, wa_w, wa_b, ua_w, ua_b, va_w)

    context = ctx_p[:B, :D].reshape(B, 1, D)
    weights = w_p[:B, :].reshape(B, 1, S)
    return context, weights


# ---------------------------------------------------------------------------
# Pure-JAX reference (mirrors the PyTorch forward) and a small test harness.
# ---------------------------------------------------------------------------

def _reference(query, keys, params):
    wq = query @ params["wa_w"].T + params["wa_b"]
    uk = keys @ params["ua_w"].T + params["ua_b"]
    scores = jnp.tanh(wq + uk) @ params["va_w"].T + params["va_b"]   # (B, S, 1)
    scores = jnp.transpose(scores, (0, 2, 1))                        # (B, 1, S)
    weights = jax.nn.softmax(scores, axis=-1)
    context = jnp.einsum("bts,bsd->btd", weights, keys)
    return context, weights


if __name__ == "__main__":
    key = jax.random.PRNGKey(0)

    def make_params(D, kp):
        k1, k2, k3, k4, k5, k6 = jax.random.split(kp, 6)
        bound = 1.0 / jnp.sqrt(jnp.float32(D))
        return {
            "wa_w": jax.random.uniform(k1, (D, D), jnp.float32, -bound, bound),
            "wa_b": jax.random.uniform(k2, (D,), jnp.float32, -bound, bound),
            "ua_w": jax.random.uniform(k3, (D, D), jnp.float32, -bound, bound),
            "ua_b": jax.random.uniform(k4, (D,), jnp.float32, -bound, bound),
            "va_w": jax.random.uniform(k5, (1, D), jnp.float32, -bound, bound),
            "va_b": jax.random.uniform(k6, (1,), jnp.float32, -bound, bound),
        }

    # Case 1: nominal small shapes (single kv step, lane-padded D).
    B, S, D = 2, 8, 32
    kq, kk, kp, key = jax.random.split(key, 4)
    params = make_params(D, kp)
    query = jax.random.normal(kq, (B, 1, D), jnp.float32)
    keys = jax.random.normal(kk, (B, S, D), jnp.float32)

    ctx, w = nn_attention(query, keys, params)
    jax.block_until_ready((ctx, w))
    ctx_exp, w_exp = _reference(query, keys, params)
    assert ctx.shape == (B, 1, D) and w.shape == (B, 1, S)
    assert jnp.allclose(ctx, ctx_exp, atol=1e-5, rtol=1e-5)
    assert jnp.allclose(w, w_exp, atol=1e-5, rtol=1e-5)

    # Case 2: forces the S-tiled online-softmax path (two kv steps).
    B2, S2, D2 = 2, 16, 32
    kq2, kk2, kp2, key = jax.random.split(key, 4)
    params2 = make_params(D2, kp2)
    query2 = jax.random.normal(kq2, (B2, 1, D2), jnp.float32)
    keys2 = jax.random.normal(kk2, (B2, S2, D2), jnp.float32)

    ctx2, w2 = nn_attention(query2, keys2, params2, block_s=8)
    jax.block_until_ready((ctx2, w2))
    ctx2_exp, w2_exp = _reference(query2, keys2, params2)
    assert jnp.allclose(ctx2, ctx2_exp, atol=1e-5, rtol=1e-5)
    assert jnp.allclose(w2, w2_exp, atol=1e-5, rtol=1e-5)

    print("KERNEL_OK")
</pallas_src>

<mosaic_0001>
module attributes {stable_mosaic.version = 11 : i64} {
  func.func @kernel(%arg0: i32, %arg1: i32, %arg2: memref<2x128xf32, #tpu.memory_space<vmem>>, %arg3: memref<2x8x128xf32, #tpu.memory_space<vmem>>, %arg4: memref<128x128xf32, #tpu.memory_space<vmem>>, %arg5: memref<1x128xf32, #tpu.memory_space<vmem>>, %arg6: memref<128x128xf32, #tpu.memory_space<vmem>>, %arg7: memref<1x128xf32, #tpu.memory_space<vmem>>, %arg8: memref<1x128xf32, #tpu.memory_space<vmem>>, %arg9: memref<2x128xf32, #tpu.memory_space<vmem>>, %arg10: memref<2x8xf32, #tpu.memory_space<vmem>>, %arg11: memref<2x128xf32, #tpu.memory_space<vmem>>, %arg12: memref<2x1xf32, #tpu.memory_space<vmem>>, %arg13: memref<2x1xf32, #tpu.memory_space<vmem>>, %arg14: memref<2x128xf32, #tpu.memory_space<vmem>>, %arg15: memref<1x8x128xf32, #tpu.memory_space<vmem>>) attributes {dimension_semantics = [#tpu.dimension_semantics<parallel>, #tpu.dimension_semantics<arbitrary>], iteration_bounds = array<i64: 1, 1>, scalar_prefetch = 0 : i64, scratch_operands = 5 : i64, tpu.core_type = #tpu.core_type<tc>, window_params = [{transform_indices = @transform_0, window_bounds = array<i64: 2, 128>}, {transform_indices = @transform_1, window_bounds = array<i64: 2, 8, 128>}, {pipeline_mode = #tpu.pipeline_mode<synchronous>, transform_indices = @transform_2, window_bounds = array<i64: 128, 128>}, {pipeline_mode = #tpu.pipeline_mode<synchronous>, transform_indices = @transform_3, window_bounds = array<i64: 1, 128>}, {pipeline_mode = #tpu.pipeline_mode<synchronous>, transform_indices = @transform_4, window_bounds = array<i64: 128, 128>}, {pipeline_mode = #tpu.pipeline_mode<synchronous>, transform_indices = @transform_5, window_bounds = array<i64: 1, 128>}, {pipeline_mode = #tpu.pipeline_mode<synchronous>, transform_indices = @transform_6, window_bounds = array<i64: 1, 128>}, {transform_indices = @transform_7, window_bounds = array<i64: 2, 128>}, {transform_indices = @transform_8, window_bounds = array<i64: 2, 8>}]} {
    %c0_i32 = arith.constant 0 : i32
    %0 = arith.cmpi eq, %arg1, %c0_i32 : i32
    %1 = arith.extui %0 : i1 to i32
    %c0_i32_0 = arith.constant 0 : i32
    %2 = arith.cmpi ne, %1, %c0_i32_0 : i32
    scf.if %2 {
      %c0_29 = arith.constant 0 : index
      %c0_30 = arith.constant 0 : index
      %49 = vector.load %arg2[%c0_29, %c0_30] : memref<2x128xf32, #tpu.memory_space<vmem>>, vector<2x128xf32>
      %c0_31 = arith.constant 0 : index
      %c0_32 = arith.constant 0 : index
      %50 = vector.load %arg4[%c0_31, %c0_32] : memref<128x128xf32, #tpu.memory_space<vmem>>, vector<128x128xf32>
      %cst_33 = arith.constant dense<0.000000e+00> : vector<2x128xf32>
      %51 = tpu.matmul %49, %50, %cst_33 {dimension_numbers = #tpu.dot_dimension_numbers<[1], [0], [0], [1], [0, 0, 1, 1], [], []>} : vector<2x128xf32>, vector<128x128xf32>, vector<2x128xf32> -> vector<2x128xf32>
      %c0_34 = arith.constant 0 : index
      %c0_35 = arith.constant 0 : index
      %52 = vector.load %arg5[%c0_34, %c0_35] : memref<1x128xf32, #tpu.memory_space<vmem>>, vector<1x128xf32>
      %53 = vector.broadcast %52 : vector<1x128xf32> to vector<2x128xf32>
      %54 = arith.addf %51, %53 : vector<2x128xf32>
      %c0_36 = arith.constant 0 : index
      %c0_37 = arith.constant 0 : index
      %55 = vector.load %arg11[%c0_36, %c0_37] : memref<2x128xf32, #tpu.memory_space<vmem>>, vector<2x128xf32>
      tpu.vector_store %arg11[%c0_36, %c0_37], %54 {strides = array<i32>} : memref<2x128xf32, #tpu.memory_space<vmem>>, vector<2x128xf32>,
      %cst_38 = arith.constant 0xFF800000 : f32
      %56 = vector.broadcast %cst_38 : f32 to vector<2x1xf32>
      %c0_39 = arith.constant 0 : index
      %c0_40 = arith.constant 0 : index
      %57 = vector.load %arg12[%c0_39, %c0_40] : memref<2x1xf32, #tpu.memory_space<vmem>>, vector<2x1xf32>
      tpu.vector_store %arg12[%c0_39, %c0_40], %56 {strides = array<i32>} : memref<2x1xf32, #tpu.memory_space<vmem>>, vector<2x1xf32>,
      %cst_41 = arith.constant 0.000000e+00 : f32
      %58 = vector.broadcast %cst_41 : f32 to vector<2x1xf32>
      %c0_42 = arith.constant 0 : index
      %c0_43 = arith.constant 0 : index
      %59 = vector.load %arg13[%c0_42, %c0_43] : memref<2x1xf32, #tpu.memory_space<vmem>>, vector<2x1xf32>
      tpu.vector_store %arg13[%c0_42, %c0_43], %58 {strides = array<i32>} : memref<2x1xf32, #tpu.memory_space<vmem>>, vector<2x1xf32>,
      %cst_44 = arith.constant 0.000000e+00 : f32
      %60 = vector.broadcast %cst_44 : f32 to vector<2x128xf32>
      %c0_45 = arith.constant 0 : index
      %c0_46 = arith.constant 0 : index
      %61 = vector.load %arg14[%c0_45, %c0_46] : memref<2x128xf32, #tpu.memory_space<vmem>>, vector<2x128xf32>
      tpu.vector_store %arg14[%c0_45, %c0_46], %60 {strides = array<i32>} : memref<2x128xf32, #tpu.memory_space<vmem>>, vector<2x128xf32>,
    } else {
    }
    %c0 = arith.constant 0 : index
    %c0_1 = arith.constant 0 : index
    %c0_2 = arith.constant 0 : index
    %3 = vector.load %arg3[%c0, %c0_1, %c0_2] : memref<2x8x128xf32, #tpu.memory_space<vmem>>, vector<2x8x128xf32>
    %4 = vector.shape_cast %3 : vector<2x8x128xf32> to vector<16x128xf32>
    %c0_3 = arith.constant 0 : index
    %c0_4 = arith.constant 0 : index
    %5 = vector.load %arg6[%c0_3, %c0_4] : memref<128x128xf32, #tpu.memory_space<vmem>>, vector<128x128xf32>
    %cst = arith.constant dense<0.000000e+00> : vector<16x128xf32>
    %6 = tpu.matmul %4, %5, %cst {dimension_numbers = #tpu.dot_dimension_numbers<[1], [0], [0], [1], [0, 0, 1, 1], [], []>} : vector<16x128xf32>, vector<128x128xf32>, vector<16x128xf32> -> vector<16x128xf32>
    %7 = vector.shape_cast %6 : vector<16x128xf32> to vector<2x8x128xf32>
    %c0_5 = arith.constant 0 : index
    %c0_6 = arith.constant 0 : index
    %8 = vector.load %arg7[%c0_5, %c0_6] : memref<1x128xf32, #tpu.memory_space<vmem>>, vector<1x128xf32>
    %9 = vector.shape_cast %8 : vector<1x128xf32> to vector<1x1x128xf32>
    %10 = vector.broadcast %9 : vector<1x1x128xf32> to vector<2x8x128xf32>
    %11 = arith.addf %7, %10 : vector<2x8x128xf32>
    %c0_7 = arith.constant 0 : index
    %c0_8 = arith.constant 0 : index
    %12 = vector.load %arg11[%c0_7, %c0_8] : memref<2x128xf32, #tpu.memory_space<vmem>>, vector<2x128xf32>
    %13 = vector.shape_cast %12 : vector<2x128xf32> to vector<2x1x128xf32>
    %14 = vector.broadcast %13 : vector<2x1x128xf32> to vector<2x8x128xf32>
    %15 = arith.addf %14, %11 : vector<2x8x128xf32>
    %16 = math.tanh %15 : vector<2x8x128xf32>
    %c0_9 = arith.constant 0 : index
    %c0_10 = arith.constant 0 : index
    %17 = vector.load %arg8[%c0_9, %c0_10] : memref<1x128xf32, #tpu.memory_space<vmem>>, vector<1x128xf32>
    %18 = vector.shape_cast %17 : vector<1x128xf32> to vector<1x1x128xf32>
    %19 = vector.broadcast %18 : vector<1x1x128xf32> to vector<2x8x128xf32>
    %20 = arith.mulf %16, %19 : vector<2x8x128xf32>
    %cst_11 = arith.constant dense<0.000000e+00> : vector<2x8xf32>
    %21 = vector.multi_reduction <add>, %20, %cst_11 [2] : vector<2x8x128xf32> to vector<2x8xf32>
    %c0_12 = arith.constant 0 : index
    %c0_13 = arith.constant 0 : index
    %22 = vector.load %arg12[%c0_12, %c0_13] : memref<2x1xf32, #tpu.memory_space<vmem>>, vector<2x1xf32>
    %cst_14 = arith.constant dense<0xFF800000> : vector<2xf32>
    %23 = vector.multi_reduction <maximumf>, %21, %cst_14 [1] : vector<2x8xf32> to vector<2xf32>
    %24 = vector.shape_cast %23 : vector<2xf32> to vector<2x1xf32>
    %25 = arith.maximumf %22, %24 : vector<2x1xf32>
    %26 = arith.subf %22, %25 : vector<2x1xf32>
    %27 = math.exp %26 : vector<2x1xf32>
    %28 = vector.broadcast %25 : vector<2x1xf32> to vector<2x8xf32>
    %29 = arith.subf %21, %28 : vector<2x8xf32>
    %30 = math.exp %29 : vector<2x8xf32>
    %c0_15 = arith.constant 0 : index
    %c0_16 = arith.constant 0 : index
    %31 = vector.load %arg13[%c0_15, %c0_16] : memref<2x1xf32, #tpu.memory_space<vmem>>, vector<2x1xf32>
    %32 = arith.mulf %27, %31 : vector<2x1xf32>
    %cst_17 = arith.constant dense<0.000000e+00> : vector<2xf32>
    %33 = vector.multi_reduction <add>, %30, %cst_17 [1] : vector<2x8xf32> to vector<2xf32>
    %34 = vector.shape_cast %33 : vector<2xf32> to vector<2x1xf32>
    %35 = arith.addf %32, %34 : vector<2x1xf32>
    %c0_18 = arith.constant 0 : index
    %c0_19 = arith.constant 0 : index
    %36 = vector.load %arg13[%c0_18, %c0_19] : memref<2x1xf32, #tpu.memory_space<vmem>>, vector<2x1xf32>
    tpu.vector_store %arg13[%c0_18, %c0_19], %35 {strides = array<i32>} : memref<2x1xf32, #tpu.memory_space<vmem>>, vector<2x1xf32>,
    %37 = vector.shape_cast %30 : vector<2x8xf32> to vector<2x1x8xf32>
    "tpu.trace_start"() <{level = 10 : i32, message = "bqk,bkd->bqd"}> : () -> ()
    %cst_20 = arith.constant dense<0.000000e+00> : vector<2x1x128xf32>
    %38 = tpu.matmul %37, %3, %cst_20 {dimension_numbers = #tpu.dot_dimension_numbers<[2], [1], [1], [2], [0, 0, 0, 1, 1, 2], [0], [0]>} : vector<2x1x8xf32>, vector<2x8x128xf32>, vector<2x1x128xf32> -> vector<2x1x128xf32>
    "tpu.trace_stop"() : () -> ()
    %39 = vector.shape_cast %38 : vector<2x1x128xf32> to vector<2x128xf32>
    %c0_21 = arith.constant 0 : index
    %c0_22 = arith.constant 0 : index
    %40 = vector.load %arg14[%c0_21, %c0_22] : memref<2x128xf32, #tpu.memory_space<vmem>>, vector<2x128xf32>
    %41 = vector.broadcast %27 : vector<2x1xf32> to vector<2x128xf32>
    %42 = arith.mulf %41, %40 : vector<2x128xf32>
    %43 = arith.addf %42, %39 : vector<2x128xf32>
    %c0_23 = arith.constant 0 : index
    %c0_24 = arith.constant 0 : index
    %44 = vector.load %arg14[%c0_23, %c0_24] : memref<2x128xf32, #tpu.memory_space<vmem>>, vector<2x128xf32>
    tpu.vector_store %arg14[%c0_23, %c0_24], %43 {strides = array<i32>} : memref<2x128xf32, #tpu.memory_space<vmem>>, vector<2x128xf32>,
    %c0_25 = arith.constant 0 : index
    %c0_26 = arith.constant 0 : index
    %45 = vector.load %arg12[%c0_25, %c0_26] : memref<2x1xf32, #tpu.memory_space<vmem>>, vector<2x1xf32>
    tpu.vector_store %arg12[%c0_25, %c0_26], %25 {strides = array<i32>} : memref<2x1xf32, #tpu.memory_space<vmem>>, vector<2x1xf32>,
    %c0_i32_27 = arith.constant 0 : i32
    %46 = arith.cmpi eq, %arg1, %c0_i32_27 : i32
    %47 = arith.extui %46 : i1 to i32
    %c0_i32_28 = arith.constant 0 : i32
    %48 = arith.cmpi ne, %47, %c0_i32_28 : i32
    scf.if %48 {
      %c0_29 = arith.constant 0 : index
      %c0_30 = arith.constant 0 : index
      %49 = vector.load %arg13[%c0_29, %c0_30] : memref<2x1xf32, #tpu.memory_space<vmem>>, vector<2x1xf32>
      %50 = tpu.reciprocal %49 : vector<2x1xf32> -> vector<2x1xf32>
      %c0_31 = arith.constant 0 : index
      %c0_32 = arith.constant 0 : index
      %51 = vector.load %arg14[%c0_31, %c0_32] : memref<2x128xf32, #tpu.memory_space<vmem>>, vector<2x128xf32>
      %52 = vector.broadcast %50 : vector<2x1xf32> to vector<2x128xf32>
      %53 = arith.mulf %51, %52 : vector<2x128xf32>
      %c0_33 = arith.constant 0 : index
      %c0_34 = arith.constant 0 : index
      %54 = vector.load %arg9[%c0_33, %c0_34] : memref<2x128xf32, #tpu.memory_space<vmem>>, vector<2x128xf32>
      tpu.vector_store %arg9[%c0_33, %c0_34], %53 {strides = array<i32>} : memref<2x128xf32, #tpu.memory_space<vmem>>, vector<2x128xf32>,
      %55 = vector.broadcast %50 : vector<2x1xf32> to vector<2x8xf32>
      %56 = arith.mulf %30, %55 : vector<2x8xf32>
      %c0_35 = arith.constant 0 : index
      %c0_36 = arith.constant 0 : index
      %57 = vector.load %arg10[%c0_35, %c0_36] : memref<2x8xf32, #tpu.memory_space<vmem>>, vector<2x8xf32>
      tpu.vector_store %arg10[%c0_35, %c0_36], %56 {strides = array<i32>} : memref<2x8xf32, #tpu.memory_space<vmem>>, vector<2x8xf32>,
    } else {
    }
    return
  }
  func.func @transform_0(%arg0: i32, %arg1: i32) -> (i32, i32) {
    %c0_i32 = arith.constant 0 : i32
    %c0_i32_0 = arith.constant 0 : i32
    return %arg0, %c0_i32 : i32, i32
  }
  func.func @transform_1(%arg0: i32, %arg1: i32) -> (i32, i32, i32) {
    %c0_i32 = arith.constant 0 : i32
    %c0_i32_0 = arith.constant 0 : i32
    return %arg0, %arg1, %c0_i32 : i32, i32, i32
  }
  func.func @transform_2(%arg0: i32, %arg1: i32) -> (i32, i32) {
    %c0_i32 = arith.constant 0 : i32
    %c0_i32_0 = arith.constant 0 : i32
    %c0_i32_1 = arith.constant 0 : i32
    return %c0_i32, %c0_i32_0 : i32, i32
  }
  func.func @transform_3(%arg0: i32, %arg1: i32) -> (i32, i32) {
    %c0_i32 = arith.constant 0 : i32
    %c0_i32_0 = arith.constant 0 : i32
    %c0_i32_1 = arith.constant 0 : i32
    return %c0_i32, %c0_i32_0 : i32, i32
  }
  func.func @transform_4(%arg0: i32, %arg1: i32) -> (i32, i32) {
    %c0_i32 = arith.constant 0 : i32
    %c0_i32_0 = arith.constant 0 : i32
    %c0_i32_1 = arith.constant 0 : i32
    return %c0_i32, %c0_i32_0 : i32, i32
  }
  func.func @transform_5(%arg0: i32, %arg1: i32) -> (i32, i32) {
    %c0_i32 = arith.constant 0 : i32
    %c0_i32_0 = arith.constant 0 : i32
    %c0_i32_1 = arith.constant 0 : i32
    return %c0_i32, %c0_i32_0 : i32, i32
  }
  func.func @transform_6(%arg0: i32, %arg1: i32) -> (i32, i32) {
    %c0_i32 = arith.constant 0 : i32
    %c0_i32_0 = arith.constant 0 : i32
    %c0_i32_1 = arith.constant 0 : i32
    return %c0_i32, %c0_i32_0 : i32, i32
  }
  func.func @transform_7(%arg0: i32, %arg1: i32) -> (i32, i32) {
    %c0_i32 = arith.constant 0 : i32
    %c0_i32_0 = arith.constant 0 : i32
    return %arg0, %c0_i32 : i32, i32
  }
  func.func @transform_8(%arg0: i32, %arg1: i32) -> (i32, i32) {
    %c0_i32 = arith.constant 0 : i32
    %c0_i32_0 = arith.constant 0 : i32
    return %arg0, %c0_i32 : i32, i32
  }
}

</mosaic_0001>

<bundles_post_ra>
// kernel: tpu_custom_call.1
= control target key start
LH: loop header
LB: loop body
LE: loop exit
PB: predicated region body
PF: predicated region fallthrough
CT: control target
= control target key end

     0   :  { %14 = vsyncpa [#allocation8], 0  ;;  %s1193_s0 = inlined_call_operand.hbm [shape: f32[2,128], index: 0, kind: input, shape index: {}]   ;;  %s1194_s1 = inlined_call_operand.hbm [shape: f32[2,8,128], index: 1, kind: input, shape index: {}]   ;;  %s1195_s2 = inlined_call_operand.hbm [shape: f32[128,128], index: 2, kind: input, shape index: {}]   ;;  %s1196_s3 = inlined_call_operand.vmem [shape: f32[1,128], index: 3, kind: input, shape index: {}]   ;;  %s1197_s4 = inlined_call_operand.hbm [shape: f32[128,128], index: 4, kind: input, shape index: {}]   ;;  %s1198_s5 = inlined_call_operand.vmem [shape: f32[1,128], index: 5, kind: input, shape index: {}]   ;;  %s1199_s6 = inlined_call_operand.vmem [shape: f32[1,128], index: 6, kind: input, shape index: {}]   ;;  %s1200_s7 = inlined_call_operand.hbm [shape: f32[2,128], index: 7, kind: output, shape index: {0}]   ;;  %s1201_s8 = inlined_call_operand.hbm [shape: f32[2,8], index: 8, kind: output, shape index: {1}]  }
   0x1   :  { %15 = vsyncpa [#allocation11], 0 }
   0x2   :  { %16 = vsyncpa [#allocation14], 0 }
   0x3   :  { %17 = vsyncpa [#allocation9], 0 }
   0x4   :  { %18 = vsyncpa [#allocation17], 0  ;;  %s995_s27 = smov [#allocation10]   ;;  %s853_s9 = scalar_lea.hbm %s1194_s1, 256 }
   0x5   :  { %s34_s28 = sshll.u32 %s995_s27, 4  ;;  %p854_p0 = scmp.ne.s32.totalorder %s1194_s1, %s853_s9  ;;  %s35_s28 = int_to_ptr.vmem [resolvable:$true] %s34_s28 }
   0x6   :  { %p857_p1 = scmp.lt.u32.totalorder %s853_s9, %s1194_s1 }
   0x8   :  { %p859_p2 = pnand %p857_p1, %p854_p0 }
   0xa   :  { %862 = shalt.err (!%p859_p2)
}
   0xb   :  { %s863_s14 = scalar_lea.vmem %s35_s28, 256  ;;  %p868_p4 = scmp.lt.s32.totalorder %s35_s28, %s35_s28 }
   0xc   :  { %p864_p3 = scmp.ne.s32.totalorder %s35_s28, %s863_s14  ;;  %p869_p5 = scmp.lt.s32.totalorder %s863_s14, %s863_s14 }
   0xe   :  { %p870_p6 = por %p869_p5, %p868_p4 }
  0x10   :  { %p871_p7 = pnand %p870_p6, %p864_p3 }
  0x12   :  { %874 = shalt.err (!%p871_p7)
}
  0x13   :  { %s996_s15 = smov 128   ;;  %s997_s16 = smov 8  }
  0x14   :  { %40 = dma.hbm_to_vmem [thread:$0]  %s1194_s1, 256, %s35_s28, [#allocation11], %s996_s15, %s996_s15, %s997_s16  }
  0x15   :  { %s998_s19 = smov [#allocation7]   ;;  %s999_s21 = smov [#allocation12]  }
  0x16   :  { %s25_s20 = sshll.u32 %s998_s19, 4  ;;  %s46_s22 = sshll.u32 %s999_s21, 4  ;;  %s26_s20 = int_to_ptr.vmem [resolvable:$true] %s25_s20  ;;  %s47_s22 = int_to_ptr.vmem [resolvable:$true] %s46_s22 }
  0x17   :  { %s875_s25 = scalar_lea.hbm %s1193_s0, 32 }
  0x18   :  { %p876_p8 = scmp.ne.s32.totalorder %s1193_s0, %s875_s25  ;;  %p879_p9 = scmp.lt.u32.totalorder %s875_s25, %s1193_s0 }
  0x1a   :  { %p881_p10 = pnand %p879_p9, %p876_p8 }
  0x1c   :  { %884 = shalt.err (!%p881_p10)
}
  0x1d   :  { %s885_s1 = scalar_lea.vmem %s26_s20, 32  ;;  %p890_p12 = scmp.lt.s32.totalorder %s26_s20, %s26_s20 }
  0x1e   :  { %p886_p11 = scmp.ne.s32.totalorder %s26_s20, %s885_s1  ;;  %p891_p13 = scmp.lt.s32.totalorder %s885_s1, %s885_s1 }
  0x20   :  { %p892_p0 = por %p891_p13, %p890_p12 }
  0x22   :  { %p893_p1 = pnand %p892_p0, %p886_p11 }
  0x24   :  { %896 = shalt.err (!%p893_p1)
}
  0x25   :  { %28 = dma.hbm_to_vmem [thread:$0]  %s1193_s0, 32, %s26_s20, [#allocation8]  }
  0x26   :  { %s897_s12 = scalar_lea.hbm %s1195_s2, 2048 }
  0x27   :  { %p898_p2 = scmp.ne.s32.totalorder %s1195_s2, %s897_s12  ;;  %p901_p3 = scmp.lt.u32.totalorder %s897_s12, %s1195_s2 }
  0x29   :  { %p903_p4 = pnand %p901_p3, %p898_p2 }
  0x2b   :  { %906 = shalt.err (!%p903_p4)
}
  0x2c   :  { %s907_s19 = scalar_lea.vmem %s47_s22, 2048  ;;  %p912_p6 = scmp.lt.s32.totalorder %s47_s22, %s47_s22 }
  0x2d   :  { %p908_p5 = scmp.ne.s32.totalorder %s47_s22, %s907_s19  ;;  %p913_p7 = scmp.lt.s32.totalorder %s907_s19, %s907_s19 }
  0x2f   :  { %p914_p8 = por %p913_p7, %p912_p6 }
  0x31   :  { %p915_p9 = pnand %p914_p8, %p908_p5 }
  0x33   :  { %918 = shalt.err (!%p915_p9)
}
  0x34   :  { %52 = dma.hbm_to_vmem [thread:$0]  %s1195_s2, 2048, %s47_s22, [#allocation11], %s996_s15, %s996_s15, %s997_s16  }
  0x35   :  { %s1000_s21 = smov [#allocation13]   ;;  %s919_s26 = scalar_lea.hbm %s1197_s4, 2048 }
  0x36   :  { %s60_s23 = sshll.u32 %s1000_s21, 4  ;;  %p920_p10 = scmp.ne.s32.totalorder %s1197_s4, %s919_s26  ;;  %s61_s23 = int_to_ptr.vmem [resolvable:$true] %s60_s23 }
  0x37   :  { %p923_p11 = scmp.lt.u32.totalorder %s919_s26, %s1197_s4 }
  0x39   :  { %p925_p12 = pnand %p923_p11, %p920_p10 }
  0x3b   :  { %928 = shalt.err (!%p925_p12)
}
  0x3c   :  { %s929_s28 = scalar_lea.vmem %s61_s23, 2048  ;;  %p934_p0 = scmp.lt.s32.totalorder %s61_s23, %s61_s23 }
  0x3d   :  { %p930_p13 = scmp.ne.s32.totalorder %s61_s23, %s929_s28  ;;  %p935_p1 = scmp.lt.s32.totalorder %s929_s28, %s929_s28 }
  0x3f   :  { %p936_p2 = por %p935_p1, %p934_p0 }
  0x41   :  { %p937_p3 = pnand %p936_p2, %p930_p13 }
  0x43   :  { %940 = shalt.err (!%p937_p3)
}
  0x44   :  { %66 = dma.hbm_to_vmem [thread:$0]  %s1197_s4, 2048, %s61_s23, [#allocation14], %s996_s15, %s996_s15, %s997_s16  }
  0x45   :  { %985 = dma.done.wait [#allocation8], 32  }
  0x46   :  { %986 = vsyncadd [#allocation8], 4294967264 }
  0x47   :  { %987 = dma.done.wait [#allocation11], 2304  }
  0x48   :  { %988 = vsyncadd [#allocation11], 4294964992 }
  0x49   :  { %989 = dma.done.wait [#allocation14], 2048  }
  0x4a   :  { %990 = vsyncadd [#allocation14], 4294965248  ;;  %v1001_v0 = vmov 0.0|0.0   ;;  %vm1002_vm0 = vmmov 0   ;;  %v1003_v1 = vmov 0.0   ;;  %v88_v2 = vld [vmem:[#allocation12] sm:$0xff]  ;;  %v301_v56 = vlaneseq }
  0x4b   :  { %769 = vmatprep.subr.bf16.mxu0 %v1001_v0  ;;  %721 = vmatprep.mubr.msk.f32.mxu0 %vm1002_vm0, %v1003_v1  ;;  %185 = vst [vmem:[#allocation5] sm:$0x3] %v1003_v1  ;;  %v89_v3 = vld [vmem:[#allocation12 + $0x8] sm:$0xff]  ;;  %v90_v4 = vld [vmem:[#allocation12 + $0x10] sm:$0xff]  ;;  %v91_v6 = vld [vmem:[#allocation12 + $0x18] sm:$0xff]  ;;  %vm182_vm1 = vcmask 1024  }
  0x4c   :  { %v770_v5 = vpack.c.bf16 %v89_v3, %v88_v2  ;;  %v188_v7 = vld [vmem:[#allocation13] sm:$0xff]  ;;  %v189_v8 = vld [vmem:[#allocation13 + $0x8] sm:$0xff]  ;;  %v773_v9 = vpack.c.bf16 %v91_v6, %v90_v4  ;;  %v190_v11 = vld [vmem:[#allocation13 + $0x10] sm:$0xff]  ;;  %v1004_v54 = vmov 1966171168   ;;  %v1131_v62 = vshrl.u32 %v301_v56, 7 }
  0x4d   :  { %v793_v10 = vpack.c.bf16 %v189_v8, %v188_v7  ;;  %v191_v12 = vld [vmem:[#allocation13 + $0x18] sm:$0xff]  ;;  %v92_v13 = vld [vmem:[#allocation12 + $0x20] sm:$0xff]  ;;  %v93_v14 = vld [vmem:[#allocation12 + $0x28] sm:$0xff]  ;;  %v299_v55 = vunpack.c.l.s4 %v1004_v54  ;;  %184 = vst.msk [vmem:[#allocation4] sm:$0x3] %vm182_vm1, %v1003_v1  ;;  %vm352_vm2 = vcmask 1041409  }
  0x4e   :  { %771 = vmatpush3.bf16.msra.mxu0 %v770_v5  ;;  %v797_v15 = vpack.c.bf16 %v191_v12, %v190_v11  ;;  %v192_v16 = vld [vmem:[#allocation13 + $0x20] sm:$0xff]  ;;  %v193_v17 = vld [vmem:[#allocation13 + $0x28] sm:$0xff]  ;;  %v776_v18 = vpack.c.bf16 %v93_v14, %v92_v13  ;;  %v94_v19 = vld [vmem:[#allocation12 + $0x30] sm:$0xff]  ;;  %v1138_v3 = vsub.s32 0, %v1131_v62  ;;  %vm355_vm3 = vcmask 58368  }
  0x4f   :  { %772 = vmatprep.subr.bf16.mxu0 %v1001_v0  ;;  %794 = vmatprep.subr.bf16.mxu1 %v793_v10  ;;  %v801_v20 = vpack.c.bf16 %v193_v17, %v192_v16  ;;  %v95_v21 = vld [vmem:[#allocation12 + $0x38] sm:$0xff]  ;;  %v194_v22 = vld [vmem:[#allocation13 + $0x30] sm:$0xff]  ;;  %v96_v25 = vld [vmem:[#allocation12 + $0x40] sm:$0xff]  ;;  %v300_v61 = vunpack.c.0.s8 %v299_v55  ;;  %vm409_vm4 = vcmask 64512  }
  0x50   :  { %796 = vmatpush3.bf16.msra.mxu1 %v793_v10  ;;  %v195_v23 = vld [vmem:[#allocation13 + $0x38] sm:$0xff]  ;;  %v779_v24 = vpack.c.bf16 %v95_v21, %v94_v19  ;;  %v186_v27 = vld [vmem:[#allocation10] sm:$0xff]  ;;  %v97_v28 = vld [vmem:[#allocation12 + $0x48] sm:$0xff]  ;;  %v1005_v19 = vmov -inf  }
  0x51   :  { %798 = vmatprep.subr.bf16.mxu1 %v797_v15  ;;  %v805_v26 = vpack.c.bf16 %v195_v23, %v194_v22  ;;  %v196_v29 = vld [vmem:[#allocation13 + $0x40] sm:$0xff]  ;;  %v197_v30 = vld [vmem:[#allocation13 + $0x48] sm:$0xff]  ;;  %756 = vmatprep.mubr.f32.mxu1 %v186_v27  ;;  %v782_v31 = vpack.c.bf16 %v97_v28, %v96_v25  ;;  %v98_v32 = vld [vmem:[#allocation12 + $0x50] sm:$0xff]  ;;  %183 = vst.msk [vmem:[#allocation3] sm:$0x3] %vm182_vm1, %v1005_v19  ;;  %v1006_v28 = vmov 0  }
  0x52   :  { %774 = vmatpush3.bf16.msra.mxu0 %v773_v9  ;;  %v809_v33 = vpack.c.bf16 %v197_v30, %v196_v29  ;;  %v99_v34 = vld [vmem:[#allocation12 + $0x58] sm:$0xff]  ;;  %v198_v35 = vld [vmem:[#allocation13 + $0x50] sm:$0xff]  ;;  %v100_v38 = vld [vmem:[#allocation12 + $0x60] sm:$0xff]  ;;  %839 = vset.pattern.permute.xlu1 %v1006_v28 }
  0x53   :  { %775 = vmatprep.subr.bf16.mxu0 %v1001_v0  ;;  %v199_v36 = vld [vmem:[#allocation13 + $0x58] sm:$0xff]  ;;  %v785_v37 = vpack.c.bf16 %v99_v34, %v98_v32  ;;  %v101_v40 = vld [vmem:[#allocation12 + $0x68] sm:$0xff]  ;;  %v200_v41 = vld [vmem:[#allocation13 + $0x60] sm:$0xff]  ;;  %840 = vset.pattern.permute.xlu0 %v1006_v28  ;;  %v373_v32 = vsub.s32 1, %v1131_v62 }
  0x54   :  { %800 = vmatpush3.bf16.msra.mxu1 %v797_v15  ;;  %v813_v39 = vpack.c.bf16 %v199_v36, %v198_v35  ;;  %v201_v42 = vld [vmem:[#allocation13 + $0x68] sm:$0xff]  ;;  %v788_v43 = vpack.c.bf16 %v101_v40, %v100_v38  ;;  %v102_v44 = vld [vmem:[#allocation12 + $0x70] sm:$0xff]  ;;  %v103_v46 = vld [vmem:[#allocation12 + $0x78] sm:$0xff] }
  0x55   :  { %802 = vmatprep.subr.bf16.mxu1 %v801_v20  ;;  %v817_v45 = vpack.c.bf16 %v201_v42, %v200_v41  ;;  %v202_v47 = vld [vmem:[#allocation13 + $0x70] sm:$0xff]  ;;  %v203_v48 = vld [vmem:[#allocation13 + $0x78] sm:$0xff]  ;;  %v791_v49 = vpack.c.bf16 %v103_v46, %v102_v44  ;;  %v87_v51 = vld [vmem:[#allocation7] sm:$0x3] }
  0x56   :  { %777 = vmatpush3.bf16.msra.mxu0 %v776_v18  ;;  %v821_v50 = vpack.c.bf16 %v203_v48, %v202_v47  ;;  %v187_v52 = vld [vmem:[#allocation10 + $0x8] sm:$0xff]  ;;  %v644_v53 = vld [vmem:[%s1196_s3] ss:$0 sm:$0xff] }
  0x57   :  { %778 = vmatprep.subr.bf16.mxu0 %v1001_v0  ;;  %v645_v2 = vld [vmem:[%s1198_s5] ss:$0 sm:$0xff]  ;;  %s1007_s5 = smov [#allocation15]  }
  0x58   :  { %804 = vmatpush3.bf16.msra.mxu1 %v801_v20  ;;  %v647_v14 = vld [vmem:[%s1199_s6] ss:$0 sm:$0xff]  ;;  %v343_v20 = vand.u32 127, %v301_v56  ;;  %s619_s6 = sshll.u32 %s1007_s5, 4  ;;  %s620_s6 = int_to_ptr.vmem [resolvable:$true] %s619_s6 }
  0x59   :  { %806 = vmatprep.subr.bf16.mxu1 %v805_v26  ;;  %s941_s11 = scalar_lea.vmem %s620_s6, 32  ;;  %p946_p5 = scmp.lt.s32.totalorder %s620_s6, %s620_s6 }
  0x5a   :  { %780 = vmatpush3.bf16.msra.mxu0 %v779_v24  ;;  %v1149_v22 = vsub.s32 %v343_v20, %v1131_v62  ;;  %p942_p4 = scmp.ne.s32.totalorder %s620_s6, %s941_s11  ;;  %p947_p6 = scmp.lt.s32.totalorder %s941_s11, %s941_s11 }
  0x5b   :  { %781 = vmatprep.subr.bf16.mxu0 %v1001_v0 }
  0x5c   :  { %808 = vmatpush3.bf16.msra.mxu1 %v805_v26  ;;  %p948_p7 = por %p947_p6, %p946_p5 }
  0x5d   :  { %810 = vmatprep.subr.bf16.mxu1 %v809_v33 }
  0x5e   :  { %783 = vmatpush3.bf16.msra.mxu0 %v782_v31  ;;  %p949_p8 = pnand %p948_p7, %p942_p4 }
  0x5f   :  { %784 = vmatprep.subr.bf16.mxu0 %v1001_v0 }
  0x60   :  { %812 = vmatpush3.bf16.msra.mxu1 %v809_v33 }
  0x61   :  { %814 = vmatprep.subr.bf16.mxu1 %v813_v39 }
  0x62   :  { %786 = vmatpush3.bf16.msra.mxu0 %v785_v37 }
  0x63   :  { %787 = vmatprep.subr.bf16.mxu0 %v1001_v0 }
  0x64   :  { %816 = vmatpush3.bf16.msra.mxu1 %v813_v39 }
  0x65   :  { %818 = vmatprep.subr.bf16.mxu1 %v817_v45 }
  0x66   :  { %789 = vmatpush3.bf16.msra.mxu0 %v788_v43 }
  0x67   :  { %790 = vmatprep.subr.bf16.mxu0 %v1001_v0  ;;  %v303_v0 = vsub.s32 %v300_v61, %v1131_v62 }
  0x68   :  { %820 = vmatpush3.bf16.msra.mxu1 %v817_v45 }
  0x69   :  { %822 = vmatprep.subr.bf16.mxu1 %v821_v50 }
  0x6a   :  { %792 = vmatpush3.bf16.msra.mxu0 %v791_v49 }
  0x6b   :  { %759 = vmatprep.subr.mxu0 %v1003_v1 }
  0x6c   :  { %824 = vmatpush3.bf16.msra.mxu1 %v821_v50  ;;  %v383_v50 = vld [vmem:[#allocation4] sm:$0x3] }
  0x6d   :  { %722 = vmatmul.mubr.f32.vlgmr.msra.gmra.mrb[0].mxu0 %v87_v51  ;;  %764 = vmatprep.subr.mxu1 %v1003_v1 }
  0x6e   :  { %760 = vmatpush3.msra.mxu0 %v186_v27  ;;  %761 = vmatprep.mubr.msk.f32.mxu0 %vm1002_vm0, %v1003_v1 }
  0x6f   :  { %757 = vmatmul.mubr.f32.vlgmr.msra.gmra.mrb[0].mxu1 %v187_v52 }
  0x70   :  { %765 = vmatpush3.msra.mxu1 %v187_v52  ;;  %766 = vmatprep.mubr.msk.f32.mxu1 %vm1002_vm0, %v1003_v1  ;;  %v339_v1 = vld [vmem:[#allocation3] sm:$0x3] }
 0x140   :  { %v177_v57 = vpop.f32.mrb[0].mxu0 }
 0x141   :  { %v178_v58 = vadd.f32 %v644_v53, %v177_v57  ;;  %v723_v59 = vpop.f32.mrb[1].mxu0 }
 0x142   :  { %v758_v60 = vpop.f32.mrb[0].mxu1 }
 0x143   :  { %181 = vst [vmem:[#allocation2] sm:$0x3] %v178_v58  ;;  %v270_v63 = vpop.f32.mrb[1].mxu1  ;;  %v287_v10 = vadd.f32 %v758_v60, %v645_v2 }
 0x144   :  { %v286_v6 = vadd.f32 %v645_v2, %v270_v63  ;;  %v554_v2 = vld [vmem:[#allocation5] sm:$0x3] }
 0x14a   :  { %v646_v4 = vld.sshfl [vmem:[#allocation2] sm:$0x11 pattern:$0x75316420] }
 0x14b   :  { %v297_v5 = vcombine.high %v646_v4, %v646_v4  ;;  %v304_v7 = vrot.slane %v646_v4, %v303_v0 }
 0x14d   :  { %v311_v8 = vrot.slane %v297_v5, %v303_v0  ;;  %v315_v9 = vrot.slane %v304_v7, %v1138_v3 }
 0x14f   :  { %v319_v11 = vrot.slane %v311_v8, %v1138_v3  ;;  %v322_v12 = vadd.f32 %v315_v9, %v286_v6 }
 0x151   :  { %v323_v13 = vadd.f32 %v319_v11, %v287_v10  ;;  %841 = vtanh.f32 %v322_v12 }
 0x153   :  { %843 = vtanh.f32 %v323_v13 }
 0x15b   :  { %v842_v15 = vpop.eup %841 }
 0x15c   :  { %v333_v16 = vmul.f32 %v842_v15, %v647_v14 }
 0x15d   :  { %v844_v17 = vpop.eup %843 }
 0x15e   :  { %335 = vadd.xlane.f32.xlu0 %v333_v16  ;;  %v334_v18 = vmul.f32 %v844_v17, %v647_v14 }
 0x162   :  { %337 = vadd.xlane.f32.xlu0 %v334_v18 }
 0x1eb   :  { %v336_v21 = vpop.xlane.xlu0 %335 }
 0x1ec   :  { %v347_v24 = vrot.slane %v336_v21, %v1149_v22 }
 0x1ef   :  { %v338_v23 = vpop.xlane.xlu0 %337 }
 0x1f0   :  { %v351_v25 = vrot.slane %v338_v23, %v1149_v22 }
 0x1f2   :  { %v353_v26 = vsel %vm352_vm2, %v351_v25, %v347_v24 }
 0x1f3   :  { %v356_v27 = vsel %vm355_vm3, %v353_v26, -inf }
 0x1f4   :  { %357 = vmax.xlane.f32.xlu1 %v356_v27 }
 0x281   :  { %v358_v29 = vpop.xlane.xlu1 %357 }
 0x282   :  { %v359_v30 = vmax.f32 %v339_v1, %v358_v29 }
 0x284   :  { %v360_v31 = vsub.f32 %v339_v1, %v359_v30  ;;  %568 = vst.msk [vmem:[#allocation3] sm:$0x3] %vm182_vm1, %v359_v30  ;;  %365 = vperm.xlu1 %839, %v359_v30  }
 0x286   :  { %v361_v48 = vmul.f32 1.442695, %v360_v31 }
 0x303   :  { %v366_v33 = vpop.permute.xlu1 %365 }
 0x304   :  { %v370_v34 = vrot.slane %v366_v33, %v1138_v3  ;;  %v374_v35 = vrot.slane %v366_v33, %v373_v32 }
 0x306   :  { %v377_v36 = vsub.f32 %v336_v21, %v370_v34  ;;  %v378_v37 = vsub.f32 %v338_v23, %v374_v35 }
 0x308   :  { %v379_v38 = vmul.f32 1.442695, %v377_v36  ;;  %v381_v39 = vmul.f32 1.442695, %v378_v37 }
 0x30a   :  { %845 = vpow2.f32 %v379_v38 }
 0x30b   :  { %847 = vpow2.f32 %v381_v39 }
 0x30c   :  { %849 = vpow2.f32 %v361_v48 }
 0x314   :  { %v846_v40 = vpop.eup %845 }
 0x315   :  { %v848_v41 = vpop.eup %847  ;;  %388 = vperm.xlu0 %840, %v846_v40  }
 0x316   :  { %391 = vperm.xlu1 %839, %v848_v41   ;;  %v850_v49 = vpop.eup %849 }
 0x317   :  { %v384_v51 = vmul.f32 %v850_v49, %v383_v50 }
 0x394   :  { %v389_v42 = vpop.permute.xlu0 %388 }
 0x395   :  { %v392_v43 = vpop.permute.xlu1 %391  ;;  %v396_v44 = vrot.slane %v389_v42, %v1149_v22 }
 0x396   :  { %v400_v45 = vrot.slane %v392_v43, %v1149_v22 }
 0x397   :  { %762 = vmatmul.mubr.msk.f32.vlgmr.msra.gmra.mrb[2].mxu0 %vm409_vm4, %v396_v44 }
 0x398   :  { %767 = vmatmul.mubr.msk.f32.vlgmr.msra.gmra.mrb[2].mxu1 %vm409_vm4, %v400_v45  ;;  %v401_v46 = vsel %vm352_vm2, %v400_v45, %v396_v44 }
 0x399   :  { %v403_v47 = vsel %vm355_vm3, %v401_v46, 0.0 }
 0x39a   :  { %404 = vadd.xlane.f32.xlu1 %v403_v47 }
 0x427   :  { %v405_v52 = vpop.xlane.xlu1 %404 }
 0x428   :  { %v406_v53 = vadd.f32 %v405_v52, %v384_v51 }
 0x42a   :  { %408 = vst.msk [vmem:[#allocation4] sm:$0x3] %vm182_vm1, %v406_v53 }
 0x431   :  { %v572_v54 = vld [vmem:[#allocation4] sm:$0x3] }
 0x432   :  { %851 = vrcp.f32 %v572_v54 }
 0x43c   :  { %v852_v55 = vpop.eup %851 }
 0x43d   :  { %577 = vperm.xlu0 %840, %v852_v55  }
 0x441   :  { %557 = vperm.xlu0 %840, %v850_v49  }
 0x46a   :  { %v478_v56 = vpop.f32.mrb[2].mxu0 }
 0x46b   :  { %v550_v57 = vpop.f32.mrb[2].mxu1  ;;  %v763_v58 = vpop.f32.mrb[3].mxu0 }
 0x46c   :  { %v563_v59 = vrot.slane %v550_v57, 7  ;;  %v768_v60 = vpop.f32.mrb[3].mxu1 }
 0x46e   :  { %v564_v61 = vsel %vm352_vm2, %v563_v59, %v478_v56 }
 0x4bc   :  { %v578_v62 = vpop.permute.xlu0 %577 }
 0x4bd   :  { %v585_v63 = vrot.slane %v578_v62, %v1138_v3  ;;  %v589_v0 = vrot.slane %v578_v62, %v373_v32 }
 0x4bf   :  { %v593_v4 = vmul.f32 %v848_v41, %v589_v0  ;;  %v592_v5 = vmul.f32 %v846_v40, %v585_v63 }
 0x4c0   :  { %v558_v6 = vpop.permute.xlu0 %557 }
 0x4c1   :  { %v560_v7 = vmul.f32 %v558_v6, %v554_v2  ;;  %600 = vperm.xlu1 %839, %v593_v4   ;;  %597 = vperm.xlu0 %840, %v592_v5  }
 0x4c3   :  { %v566_v8 = vadd.f32 %v564_v61, %v560_v7 }
 0x4c5   :  { %567 = vst [vmem:[#allocation5] sm:$0x3] %v566_v8 }
 0x4cc   :  { %v574_v9 = vld [vmem:[#allocation5] sm:$0x3] }
 0x4cd   :  { %v580_v10 = vmul.f32 %v578_v62, %v574_v9 }
 0x4cf   :  { %581 = vst [vmem:[#allocation15] sm:$0x3] %v580_v10 }
 0x4d0   :  { %952 = shalt.err (!%p949_p8)
}
 0x4d1   :  { %s953_s14 = scalar_lea.hbm %s1200_s7, 32 }
 0x4d2   :  { %p954_p9 = scmp.ne.s32.totalorder %s1200_s7, %s953_s14  ;;  %p957_p10 = scmp.lt.u32.totalorder %s953_s14, %s1200_s7 }
 0x4d4   :  { %p959_p11 = pnand %p957_p10, %p954_p9 }
 0x4d6   :  { %962 = shalt.err (!%p959_p11)
}
 0x4d7   :  { %622 = dma.vmem_to_hbm [thread:$0]  %s620_s6, 32, %s1200_s7, [#allocation9]  }
 0x4d8   :  { %s1008_s23 = smov [#allocation16]  }
 0x4d9   :  { %s629_s24 = sshll.u32 %s1008_s23, 4  ;;  %s630_s24 = int_to_ptr.vmem [resolvable:$true] %s629_s24 }
 0x4da   :  { %s963_s25 = scalar_lea.vmem %s630_s24, 32  ;;  %p968_p13 = scmp.lt.s32.totalorder %s630_s24, %s630_s24 }
 0x4db   :  { %p964_p12 = scmp.ne.s32.totalorder %s630_s24, %s963_s25  ;;  %p969_p0 = scmp.lt.s32.totalorder %s963_s25, %s963_s25 }
 0x4dd   :  { %p970_p1 = por %p969_p0, %p968_p13 }
 0x4df   :  { %p971_p2 = pnand %p970_p1, %p964_p12 }
 0x540   :  { %v601_v3 = vpop.permute.xlu1 %600  ;;  %v598_v11 = vpop.permute.xlu0 %597 }
 0x541   :  { %v609_v12 = vrot.slane %v601_v3, %v1149_v22  ;;  %v605_v13 = vrot.slane %v598_v11, %v1149_v22 }
 0x543   :  { %v610_v14 = vsel %vm352_vm2, %v609_v12, %v605_v13 }
 0x544   :  { %612 = vst.msk [vmem:[#allocation16] sm:$0x3] %vm355_vm3, %v610_v14 }
 0x545   :  { %974 = shalt.err (!%p971_p2)
}
 0x546   :  { %s975_s27 = scalar_lea.hbm %s1201_s8, 32 }
 0x547   :  { %p976_p3 = scmp.ne.s32.totalorder %s1201_s8, %s975_s27  ;;  %p979_p4 = scmp.lt.u32.totalorder %s975_s27, %s1201_s8 }
 0x549   :  { %p981_p5 = pnand %p979_p4, %p976_p3 }
 0x54b   :  { %984 = shalt.err (!%p981_p5)
}
 0x54c   :  { %632 = dma.vmem_to_hbm [thread:$0]  %s630_s24, 32, %s1201_s8, [#allocation17]  }
 0x54d   :  { %991 = dma.done.wait [#allocation9], 32  }
 0x54e   :  { %992 = vsyncadd [#allocation9], 4294967264 }
 0x54f   :  { %993 = dma.done.wait [#allocation17], 32  }
 0x550   :  { %994 = vsyncadd [#allocation17], 4294967264 }
 0x551   :  { %639 = vsyncpa [#allocation8], 1 }
 0x552   :  { %640 = vsyncpa [#allocation11], 1 }
 0x553   :  { %641 = vsyncpa [#allocation14], 1 }
 0x554   :  { %642 = vsyncpa [#allocation9], 1 }
 0x555   :  { %643 = vsyncpa [#allocation17], 1 }

</bundles_post_ra>
